<compile_context>
chip_gen: v5e
topology: v5e:2x2
jax: 0.10.0
libtpu: 0.0.40
codegen_flags: <defaults>
</compile_context>

<pallas_src>
import math

import jax
import jax.numpy as jnp
from jax.experimental import pallas as pl
from jax.experimental.pallas import tpu as pltpu


def _drop_path_kernel(scale_ref, x_ref, o_ref):
    # scale_ref: (TILE_B, 1, 1) f32, per-sample 0.0 or 1/keep_prob.
    # x_ref/o_ref: (TILE_B, TILE_R, L) in the input dtype.
    # Multiply in f32 and cast the result (avoids rounding 1/keep_prob to bf16).
    o_ref[...] = (x_ref[...].astype(jnp.float32) * scale_ref[...]).astype(o_ref.dtype)


def _choose_block(B, R, L, itemsize, budget_bytes=2 << 20):
    """Pick (tile_b, tile_r) so one block is <= ~2 MiB and tiles are legal."""
    row_bytes = L * itemsize
    # Row tiling within a sample: tile must be a multiple of 8 dividing R,
    # or the full R (which is always a legal block extent).
    tile_r = R
    if R % 8 == 0 and R * row_bytes > budget_bytes:
        tile_r = 8
        for t in range(16, R + 1, 8):
            if R % t == 0 and t * row_bytes <= budget_bytes:
                tile_r = t
    # Batch several samples per grid step to amortize per-step overhead
    # (only when a whole sample fits in one block).
    tile_b = 1
    if tile_r == R:
        for t in range(2, B + 1):
            if B % t == 0 and t * tile_r * row_bytes <= budget_bytes:
                tile_b = t
    return tile_b, tile_r


def drop_path(x, drop_rate: float = 0.0, training: bool = False, *,
              seed: int = 0, rng_key=None):
    """Pallas DropPath.  x: (B, ...) array (e.g. NCHW)."""
    if drop_rate == 0.0 or not training:
        return x
    keep_prob = 1.0 - float(drop_rate)

    B = x.shape[0]
    F = math.prod(x.shape[1:])

    # Lane-dense per-sample view: (B, R, L) with L = 128 when possible.
    if F % 128 == 0:
        R, L = F // 128, 128
    else:
        R, L = 1, F  # fallback: correct, but sublane-padded
    x3 = x.reshape(B, R, L)

    # Per-sample mask/scale computed host-side (B scalars), matching
    # torch's floor(keep_prob + rand()) semantics.
    # TODO(synk): uses JAX's RNG stream, not bitwise identical to torch.rand.
    key = jax.random.PRNGKey(seed) if rng_key is None else rng_key
    u = jax.random.uniform(key, (B,), dtype=jnp.float32)
    mask = jnp.floor(jnp.float32(keep_prob) + u)
    scale3 = (mask * jnp.float32(1.0 / keep_prob)).reshape(B, 1, 1)

    tile_b, tile_r = _choose_block(B, R, L, jnp.dtype(x.dtype).itemsize)
    grid = (B // tile_b, R // tile_r)

    out3 = pl.pallas_call(
        _drop_path_kernel,
        out_shape=jax.ShapeDtypeStruct((B, R, L), x.dtype),
        grid=grid,
        in_specs=[
            pl.BlockSpec((tile_b, 1, 1), lambda b, r: (b, 0, 0)),
            pl.BlockSpec((tile_b, tile_r, L), lambda b, r: (b, r, 0)),
        ],
        out_specs=pl.BlockSpec((tile_b, tile_r, L), lambda b, r: (b, r, 0)),
        compiler_params=pltpu.CompilerParams(
            # No cross-iteration state (scale is precomputed), so both axes
            # can shard across TensorCores (helps v7x, neutral on v5e/v6e).
            dimension_semantics=("parallel", "parallel"),
        ),
    )(scale3, x3)

    return out3.reshape(x.shape)


class DropPath:
    """Mirror of the PyTorch module: holds drop_rate and a training flag."""

    def __init__(self, drop_rate=None):
        self.drop_rate = drop_rate
        self.training = True

    def __call__(self, x, *, seed: int = 0, rng_key=None):
        rate = 0.0 if self.drop_rate is None else self.drop_rate
        return drop_path(x, rate, self.training, seed=seed, rng_key=rng_key)


if __name__ == "__main__":
    key = jax.random.PRNGKey(0)
    B, C, H, W = 2, 4, 16, 16
    x = jax.random.normal(key, (B, C, H, W), dtype=jnp.float32)

    mod = DropPath(drop_rate=0.3)
    mod.training = True
    y = jax.block_until_ready(mod(x, seed=0))
    assert y.shape == x.shape and y.dtype == x.dtype

    # Sanity: each sample is either exactly zero or exactly x / keep_prob.
    keep_prob = 1.0 - 0.3
    for b in range(B):
        yb = y[b]
        xb = x[b] / keep_prob
        is_zero = bool(jnp.all(yb == 0.0))
        is_scaled = bool(jnp.allclose(yb, xb, rtol=1e-6, atol=1e-6))
        assert is_zero or is_scaled

    # Eval mode / zero rate: identity path (no kernel), per reference semantics.
    mod.training = False
    y_eval = jax.block_until_ready(mod(x))
    assert bool(jnp.all(y_eval == x))

    print("KERNEL_OK")
</pallas_src>

<mosaic_0001>
module attributes {stable_mosaic.version = 11 : i64} {
  func.func @_drop_path_kernel(%arg0: i32, %arg1: i32, %arg2: memref<2x1x1xf32, #tpu.memory_space<vmem>>, %arg3: memref<2x8x128xf32, #tpu.memory_space<vmem>>, %arg4: memref<2x8x128xf32, #tpu.memory_space<vmem>>) attributes {dimension_semantics = [#tpu.dimension_semantics<parallel>, #tpu.dimension_semantics<parallel>], iteration_bounds = array<i64: 1, 1>, scalar_prefetch = 0 : i64, scratch_operands = 0 : i64, tpu.core_type = #tpu.core_type<tc>, window_params = [{transform_indices = @transform_0, window_bounds = array<i64: 2, 1, 1>}, {transform_indices = @transform_1, window_bounds = array<i64: 2, 8, 128>}, {transform_indices = @transform_2, window_bounds = array<i64: 2, 8, 128>}]} {
    %c0 = arith.constant 0 : index
    %c0_0 = arith.constant 0 : index
    %c0_1 = arith.constant 0 : index
    %0 = vector.load %arg3[%c0, %c0_0, %c0_1] : memref<2x8x128xf32, #tpu.memory_space<vmem>>, vector<2x8x128xf32>
    %c0_2 = arith.constant 0 : index
    %c0_3 = arith.constant 0 : index
    %c0_4 = arith.constant 0 : index
    %1 = vector.load %arg2[%c0_2, %c0_3, %c0_4] : memref<2x1x1xf32, #tpu.memory_space<vmem>>, vector<2x1x1xf32>
    %2 = vector.broadcast %1 : vector<2x1x1xf32> to vector<2x8x128xf32>
    %3 = arith.mulf %0, %2 : vector<2x8x128xf32>
    %c0_5 = arith.constant 0 : index
    %c0_6 = arith.constant 0 : index
    %c0_7 = arith.constant 0 : index
    %4 = vector.load %arg4[%c0_5, %c0_6, %c0_7] : memref<2x8x128xf32, #tpu.memory_space<vmem>>, vector<2x8x128xf32>
    tpu.vector_store %arg4[%c0_5, %c0_6, %c0_7], %3 {strides = array<i32>} : memref<2x8x128xf32, #tpu.memory_space<vmem>>, vector<2x8x128xf32>,
    return
  }
  func.func @transform_0(%arg0: i32, %arg1: i32) -> (i32, i32, i32) {
    %c0_i32 = arith.constant 0 : i32
    %c0_i32_0 = arith.constant 0 : i32
    %c0_i32_1 = arith.constant 0 : i32
    return %arg0, %c0_i32, %c0_i32_0 : i32, i32, i32
  }
  func.func @transform_1(%arg0: i32, %arg1: i32) -> (i32, i32, i32) {
    %c0_i32 = arith.constant 0 : i32
    %c0_i32_0 = arith.constant 0 : i32
    return %arg0, %arg1, %c0_i32 : i32, i32, i32
  }
  func.func @transform_2(%arg0: i32, %arg1: i32) -> (i32, i32, i32) {
    %c0_i32 = arith.constant 0 : i32
    %c0_i32_0 = arith.constant 0 : i32
    return %arg0, %arg1, %c0_i32 : i32, i32, i32
  }
}

</mosaic_0001>

<bundles_post_ra>
// kernel: tpu_custom_call.1
= control target key start
LH: loop header
LB: loop body
LE: loop exit
PB: predicated region body
PF: predicated region fallthrough
CT: control target
= control target key end

     0   :  { %7 = vsyncpa [#allocation3], 0  ;;  %s159_s0 = inlined_call_operand.vmem [shape: f32[2,1,1], index: 0, kind: input, shape index: {}]   ;;  %s160_s1 = inlined_call_operand.hbm [shape: f32[2,8,128], index: 1, kind: input, shape index: {}]   ;;  %s161_s2 = inlined_call_operand.hbm [shape: f32[2,8,128], index: 2, kind: output, shape index: {}]  }
   0x1   :  { %8 = vsyncpa [#allocation4], 0  ;;  %s15_s11 = sshll.u32 %s160_s1, 4  ;;  %s127_s12 = smov [#allocation2]   ;;  %s16_s11 = int_to_ptr.hbm [resolvable:$true] %s15_s11 }
   0x2   :  { %s17_s13 = sshll.u32 %s127_s12, 4  ;;  %s128_s14 = smov 128   ;;  %s18_s13 = int_to_ptr.vmem [resolvable:$true] %s17_s13 }
   0x3   :  { %s129_s15 = smov 8  }
   0x4   :  { %23 = dma.hbm_to_vmem [thread:$0]  %s16_s11, 256, %s18_s13, [#allocation3], %s128_s14, %s128_s14, %s129_s15  }
   0x5   :  { %123 = dma.done.wait [#allocation3], 256  }
   0x6   :  { %124 = vsyncadd [#allocation3], 4294967040  ;;  %v130_v0 = vmov 0   ;;  %v73_v1 = vld [vmem:[%s159_s0] ss:$0 sm:$0xff]  ;;  %v29_v6 = vld [vmem:[#allocation2 + $0x8] sm:$0xff] }
   0x7   :  { %72 = vset.pattern.permute.xlu0 %v130_v0  ;;  %v74_v2 = vld [vmem:[%s159_s0 + $0x1] ss:$0 sm:$0xff]  ;;  %s131_s1 = smov [#allocation5]   ;;  %s54_s23 = sshll.u32 %s161_s2, 4  ;;  %s55_s23 = int_to_ptr.hbm [resolvable:$true] %s54_s23 }
   0x8   :  { %37 = vperm.xlu0 %72, %v73_v1   ;;  %v28_v3 = vld [vmem:[#allocation2] sm:$0xff]  ;;  %s52_s20 = sshll.u32 %s131_s1, 4  ;;  %s53_s20 = int_to_ptr.vmem [resolvable:$true] %s52_s20 }
  0x10   :  { %41 = vperm.xlu0 %72, %v74_v2  }
  0x7a   :  { %v38_v4 = vpop.permute.xlu0 %37 }
  0x7b   :  { %v44_v5 = vmul.f32 %v38_v4, %v28_v3 }
  0x7d   :  { %46 = vst [vmem:[#allocation5] sm:$0xff] %v44_v5 }
  0x82   :  { %v42_v7 = vpop.permute.xlu0 %41 }
  0x83   :  { %v45_v8 = vmul.f32 %v42_v7, %v29_v6 }
  0x85   :  { %47 = vst [vmem:[#allocation5 + $0x8] sm:$0xff] %v45_v8 }
  0x86   :  { %60 = dma.vmem_to_hbm [thread:$0]  %s53_s20, 256, %s55_s23, [#allocation4], %s128_s14, %s128_s14, %s129_s15  }
  0x87   :  { %125 = dma.done.wait [#allocation4], 256  }
  0x88   :  { %126 = vsyncadd [#allocation4], 4294967040 }
  0x89   :  { %65 = vsyncpa [#allocation3], 1 }
  0x8a   :  { %66 = vsyncpa [#allocation4], 1 }

</bundles_post_ra>
